<compile_context>
chip_gen: v6e
topology: v6e:2x2x1
jax: 0.10.0
libtpu: 0.0.40
codegen_flags: <defaults>
</compile_context>

<pallas_src>
import functools
import math

import jax
import jax.numpy as jnp
from jax.experimental import pallas as pl
from jax.experimental.pallas import tpu as pltpu


def _add_cls_kernel(x_tail_ref, x_head_ref, cls_start_ref, cls_end_ref, o_ref,
                    *, T, TB):
    """Write one (1, TB, F, D) frame-block of the (B, T+2, F, D) output.

    Global output frame t maps to:
        t == 0       -> cls_start
        1 <= t <= T  -> x frame (t - 1)
        t == T + 1   -> cls_end
    Block j covers output frames [j*TB, (j+1)*TB).  Its x sources are the one
    "head" frame j*TB - 1 (tiny separate fetch) plus the first TB-1 frames of
    x block j (the big streaming fetch).
    """
    j = pl.program_id(1)
    t_first = j * TB                                    # first output frame

    # Interior block: every output frame comes straight from x.
    is_interior = jnp.logical_and(t_first >= 1, t_first + TB <= T + 1)

    @pl.when(is_interior)
    def _interior():
        # Branch-free hot path: plain copies, no iota / compare / select.
        o_ref[0, 0, :, :] = x_head_ref[0, 0, :, :]
        o_ref[0, 1:TB, :, :] = x_tail_ref[0, 0:TB - 1, :, :]

    @pl.when(jnp.logical_not(is_interior))
    def _edge():
        cls_start = cls_start_ref[...]                  # (1, D)
        cls_end = cls_end_ref[...]                      # (1, D)

        # Frame 0 of this block.
        head_src = x_head_ref[0, 0, :, :]               # (F, D)
        head = jnp.where(t_first == 0, cls_start,
                         jnp.where(t_first >= T + 1, cls_end, head_src))
        o_ref[0, 0, :, :] = head.astype(o_ref.dtype)

        # Frames 1 .. TB-1 of this block (global frame ids t_first+1 ..).
        t = t_first + 1 + jax.lax.broadcasted_iota(jnp.int32, (TB - 1, 1, 1), 0)
        tail_src = x_tail_ref[0, 0:TB - 1, :, :]        # (TB-1, F, D)
        tail = jnp.where(t >= T + 1, cls_end, tail_src)
        o_ref[0, 1:TB, :, :] = tail.astype(o_ref.dtype)


def _choose_frames_per_block(T, F, D, itemsize, target_bytes, vmem_budget_bytes):
    """Frames per block: big enough to hit the bandwidth target, TB*F kept a
    multiple of the sublane packing, >= 2 (head+tail split needs it), and
    clamped so the double-buffered VMEM footprint stays inside the budget."""
    frame_bytes = F * D * itemsize
    row_align = 8 * max(1, 4 // itemsize)          # f32: 8, bf16: 16, int8: 32
    mult = row_align // math.gcd(F, row_align)     # TB multiple -> TB*F aligned
    tb_min = max(2, mult)

    # From the bandwidth target (round up to alignment).
    tb = max(tb_min, target_bytes // max(frame_bytes, 1))
    tb = -(-tb // mult) * mult

    # No bigger than the whole (T+2)-frame output.
    tb_all = -(-(T + 2) // mult) * mult
    tb = min(tb, max(tb_all, tb_min))

    # Clamp to the VMEM budget: 2x in-block + 2x out-block + 2x head + cls.
    per_frame = 4 * frame_bytes
    fixed = 2 * frame_bytes + 4 * D * itemsize
    tb_max = int((vmem_budget_bytes - fixed) // per_frame)
    tb_max = max(tb_min, (tb_max // mult) * mult)
    return max(tb_min, min(tb, tb_max))


def add_cls_frames(x, cls_start, cls_end, *,
                   target_block_bytes=6 * 1024 * 1024,
                   vmem_budget_bytes=40 * 1024 * 1024):
    """x: (B, T, F, D); cls_start, cls_end: (1, 1, D).  Returns (B, T+2, F, D)."""
    B, T, F, D = x.shape
    assert T >= 1, "AddCLSFrames requires at least one input frame"
    assert cls_start.shape[-1] == D and cls_end.shape[-1] == D, \
        "cls embedding dim must match x"

    # O(D) wrapper-side prep: keep the kernel a pure same-dtype copy.
    cls_start = jnp.asarray(cls_start, dtype=x.dtype).reshape(1, D)
    cls_end = jnp.asarray(cls_end, dtype=x.dtype).reshape(1, D)

    itemsize = jnp.dtype(x.dtype).itemsize
    TB = _choose_frames_per_block(T, F, D, itemsize,
                                  target_block_bytes, vmem_budget_bytes)
    assert TB >= 2, "block must hold at least a head frame and one tail frame"

    NB_in = pl.cdiv(T, TB)
    NB_out = pl.cdiv(T + 2, TB)

    # Derive the VMEM limit from the actual double-buffered footprint.
    block_bytes = TB * F * D * itemsize
    head_bytes = F * D * itemsize
    footprint = 4 * block_bytes + 2 * head_bytes + 4 * D * itemsize
    vmem_limit = min(max(16 * 1024 * 1024, footprint + 8 * 1024 * 1024),
                     56 * 1024 * 1024)

    kernel = functools.partial(_add_cls_kernel, T=T, TB=TB)

    def tail_index_map(b, j):
        # x frame-block aligned with the output block (clamped: the clamped
        # fetch only happens when every frame it would feed is cls_end/masked).
        return (b, jnp.minimum(j, NB_in - 1), 0, 0)

    def head_index_map(b, j):
        # The single x frame preceding this block's first output frame.
        return (b, jnp.clip(j * TB - 1, 0, T - 1), 0, 0)

    out = pl.pallas_call(
        kernel,
        out_shape=jax.ShapeDtypeStruct((B, T + 2, F, D), x.dtype),
        grid_spec=pltpu.PrefetchScalarGridSpec(
            num_scalar_prefetch=0,
            grid=(B, NB_out),
            in_specs=[
                pl.BlockSpec((1, TB, F, D), tail_index_map),      # big x slab
                pl.BlockSpec((1, 1, F, D), head_index_map),       # preceding frame
                pl.BlockSpec((1, D), lambda b, j: (0, 0)),        # cls_start
                pl.BlockSpec((1, D), lambda b, j: (0, 0)),        # cls_end
            ],
            out_specs=pl.BlockSpec((1, TB, F, D), lambda b, j: (b, j, 0, 0)),
        ),
        compiler_params=pltpu.CompilerParams(
            dimension_semantics=("parallel", "parallel"),
            vmem_limit_bytes=vmem_limit,
        ),
        cost_estimate=pl.CostEstimate(
            flops=0,
            transcendentals=0,
            bytes_accessed=(B * T * F * D + B * (T + 2) * F * D) * itemsize,
        ),
    )(x, x, cls_start, cls_end)

    return out


def _reference(x, cls_start, cls_end):
    B, T, F, D = x.shape
    cs = jnp.broadcast_to(jnp.asarray(cls_start, x.dtype).reshape(1, 1, 1, D),
                          (B, 1, F, D))
    ce = jnp.broadcast_to(jnp.asarray(cls_end, x.dtype).reshape(1, 1, 1, D),
                          (B, 1, F, D))
    return jnp.concatenate([cs, x, ce], axis=1)


if __name__ == "__main__":
    key = jax.random.PRNGKey(0)
    k_x, k_s, k_e, k_x2 = jax.random.split(key, 4)

    # Small shapes consistent with the module's (B, T, F, D) input.
    B, T, F, D = 2, 4, 8, 128
    x = jax.random.normal(k_x, (B, T, F, D), dtype=jnp.float32)
    cls_start = jax.random.normal(k_s, (1, 1, D), dtype=jnp.float32)
    cls_end = jax.random.normal(k_e, (1, 1, D), dtype=jnp.float32)

    out = jax.block_until_ready(add_cls_frames(x, cls_start, cls_end))
    ref = _reference(x, cls_start, cls_end)
    assert out.shape == (B, T + 2, F, D)
    assert jnp.allclose(out, ref), "Pallas output mismatch vs reference"

    # Second check: force a multi-block grid (small blocks, interior + edge
    # blocks, partial input AND partial output blocks) to exercise the
    # pl.when-gated copy path and the masked edge path.
    T2 = 9
    x2 = jax.random.normal(k_x2, (B, T2, F, D), dtype=jnp.float32)
    out2 = jax.block_until_ready(
        add_cls_frames(x2, cls_start, cls_end, target_block_bytes=3 * F * D * 4)
    )
    ref2 = _reference(x2, cls_start, cls_end)
    assert out2.shape == (B, T2 + 2, F, D)
    assert jnp.allclose(out2, ref2), "Pallas multi-block output mismatch"

    print("KERNEL_OK")
</pallas_src>

<mosaic_0001>
module attributes {stable_mosaic.version = 11 : i64} {
  func.func @_add_cls_kernel(%arg0: i32, %arg1: i32, %arg2: memref<1x6x8x128xf32, #tpu.memory_space<vmem>>, %arg3: memref<1x1x8x128xf32, #tpu.memory_space<vmem>>, %arg4: memref<1x128xf32, #tpu.memory_space<vmem>>, %arg5: memref<1x128xf32, #tpu.memory_space<vmem>>, %arg6: memref<1x6x8x128xf32, #tpu.memory_space<vmem>>) attributes {dimension_semantics = [#tpu.dimension_semantics<parallel>, #tpu.dimension_semantics<parallel>], iteration_bounds = array<i64: 2, 1>, scalar_prefetch = 0 : i64, scratch_operands = 0 : i64, tpu.core_type = #tpu.core_type<tc>, window_params = [{transform_indices = @transform_0, window_bounds = array<i64: 1, 6, 8, 128>}, {transform_indices = @transform_1, window_bounds = array<i64: 1, 1, 8, 128>}, {pipeline_mode = #tpu.pipeline_mode<synchronous>, transform_indices = @transform_2, window_bounds = array<i64: 1, 128>}, {pipeline_mode = #tpu.pipeline_mode<synchronous>, transform_indices = @transform_3, window_bounds = array<i64: 1, 128>}, {transform_indices = @transform_4, window_bounds = array<i64: 1, 6, 8, 128>}]} {
    %c6_i32 = arith.constant 6 : i32
    %0 = arith.muli %arg1, %c6_i32 : i32
    %c1_i32 = arith.constant 1 : i32
    %1 = arith.cmpi sge, %0, %c1_i32 : i32
    %c6_i32_0 = arith.constant 6 : i32
    %2 = arith.addi %0, %c6_i32_0 : i32
    %c5_i32 = arith.constant 5 : i32
    %3 = arith.cmpi sle, %2, %c5_i32 : i32
    %4 = arith.andi %1, %3 : i1
    %5 = arith.extui %4 : i1 to i32
    %c0_i32 = arith.constant 0 : i32
    %6 = arith.cmpi ne, %5, %c0_i32 : i32
    scf.if %6 {
      %c0 = arith.constant 0 : index
      %c0_2 = arith.constant 0 : index
      %c0_3 = arith.constant 0 : index
      %c0_4 = arith.constant 0 : index
      %10 = vector.load %arg3[%c0, %c0_2, %c0_3, %c0_4] : memref<1x1x8x128xf32, #tpu.memory_space<vmem>>, vector<1x1x8x128xf32>
      %11 = vector.shape_cast %10 : vector<1x1x8x128xf32> to vector<8x128xf32>
      %c0_5 = arith.constant 0 : index
      %c0_6 = arith.constant 0 : index
      %c0_7 = arith.constant 0 : index
      %c0_8 = arith.constant 0 : index
      %12 = vector.load %arg6[%c0_5, %c0_6, %c0_7, %c0_8] : memref<1x6x8x128xf32, #tpu.memory_space<vmem>>, vector<1x1x8x128xf32>
      %13 = vector.shape_cast %12 : vector<1x1x8x128xf32> to vector<8x128xf32>
      %14 = vector.shape_cast %11 : vector<8x128xf32> to vector<1x1x8x128xf32>
      tpu.vector_store %arg6[%c0_5, %c0_6, %c0_7, %c0_8], %14 {strides = array<i32>} : memref<1x6x8x128xf32, #tpu.memory_space<vmem>>, vector<1x1x8x128xf32>,
      %c0_9 = arith.constant 0 : index
      %c0_10 = arith.constant 0 : index
      %c0_11 = arith.constant 0 : index
      %c0_12 = arith.constant 0 : index
      %15 = vector.load %arg2[%c0_9, %c0_10, %c0_11, %c0_12] : memref<1x6x8x128xf32, #tpu.memory_space<vmem>>, vector<1x5x8x128xf32>
      %16 = vector.shape_cast %15 : vector<1x5x8x128xf32> to vector<5x8x128xf32>
      %c0_13 = arith.constant 0 : index
      %c1 = arith.constant 1 : index
      %c0_14 = arith.constant 0 : index
      %c0_15 = arith.constant 0 : index
      %17 = vector.load %arg6[%c0_13, %c1, %c0_14, %c0_15] : memref<1x6x8x128xf32, #tpu.memory_space<vmem>>, vector<1x5x8x128xf32>
      %18 = vector.shape_cast %17 : vector<1x5x8x128xf32> to vector<5x8x128xf32>
      %19 = vector.shape_cast %16 : vector<5x8x128xf32> to vector<1x5x8x128xf32>
      tpu.vector_store %arg6[%c0_13, %c1, %c0_14, %c0_15], %19 {strides = array<i32>} : memref<1x6x8x128xf32, #tpu.memory_space<vmem>>, vector<1x5x8x128xf32>,
    } else {
    }
    %true = arith.constant true
    %7 = arith.xori %4, %true : i1
    %8 = arith.extui %7 : i1 to i32
    %c0_i32_1 = arith.constant 0 : i32
    %9 = arith.cmpi ne, %8, %c0_i32_1 : i32
    scf.if %9 {
      %c0 = arith.constant 0 : index
      %c0_2 = arith.constant 0 : index
      %10 = vector.load %arg4[%c0, %c0_2] : memref<1x128xf32, #tpu.memory_space<vmem>>, vector<1x128xf32>
      %c0_3 = arith.constant 0 : index
      %c0_4 = arith.constant 0 : index
      %11 = vector.load %arg5[%c0_3, %c0_4] : memref<1x128xf32, #tpu.memory_space<vmem>>, vector<1x128xf32>
      %c0_5 = arith.constant 0 : index
      %c0_6 = arith.constant 0 : index
      %c0_7 = arith.constant 0 : index
      %c0_8 = arith.constant 0 : index
      %12 = vector.load %arg3[%c0_5, %c0_6, %c0_7, %c0_8] : memref<1x1x8x128xf32, #tpu.memory_space<vmem>>, vector<1x1x8x128xf32>
      %13 = vector.shape_cast %12 : vector<1x1x8x128xf32> to vector<8x128xf32>
      %c0_i32_9 = arith.constant 0 : i32
      %14 = arith.cmpi eq, %0, %c0_i32_9 : i32
      %c5_i32_10 = arith.constant 5 : i32
      %15 = arith.cmpi sge, %0, %c5_i32_10 : i32
      %16 = vector.shape_cast %11 : vector<1x128xf32> to vector<1x128xf32>
      %17 = vector.broadcast %16 : vector<1x128xf32> to vector<8x128xf32>
      %18 = arith.select %15, %17, %13 : vector<8x128xf32>
      %19 = vector.shape_cast %10 : vector<1x128xf32> to vector<1x128xf32>
      %20 = vector.broadcast %19 : vector<1x128xf32> to vector<8x128xf32>
      %21 = arith.select %14, %20, %18 : vector<8x128xf32>
      %c0_11 = arith.constant 0 : index
      %c0_12 = arith.constant 0 : index
      %c0_13 = arith.constant 0 : index
      %c0_14 = arith.constant 0 : index
      %22 = vector.load %arg6[%c0_11, %c0_12, %c0_13, %c0_14] : memref<1x6x8x128xf32, #tpu.memory_space<vmem>>, vector<1x1x8x128xf32>
      %23 = vector.shape_cast %22 : vector<1x1x8x128xf32> to vector<8x128xf32>
      %24 = vector.shape_cast %21 : vector<8x128xf32> to vector<1x1x8x128xf32>
      tpu.vector_store %arg6[%c0_11, %c0_12, %c0_13, %c0_14], %24 {strides = array<i32>} : memref<1x6x8x128xf32, #tpu.memory_space<vmem>>, vector<1x1x8x128xf32>,
      %c1_i32_15 = arith.constant 1 : i32
      %25 = arith.addi %0, %c1_i32_15 : i32
      %26 = tpu.iota {dimensions = array<i32: 0>} : vector<5x1x1xi32>
      %27 = vector.broadcast %25 : i32 to vector<5x1x1xi32>
      %28 = arith.addi %27, %26 : vector<5x1x1xi32>
      %c0_16 = arith.constant 0 : index
      %c0_17 = arith.constant 0 : index
      %c0_18 = arith.constant 0 : index
      %c0_19 = arith.constant 0 : index
      %29 = vector.load %arg2[%c0_16, %c0_17, %c0_18, %c0_19] : memref<1x6x8x128xf32, #tpu.memory_space<vmem>>, vector<1x5x8x128xf32>
      %30 = vector.shape_cast %29 : vector<1x5x8x128xf32> to vector<5x8x128xf32>
      %c5_i32_20 = arith.constant 5 : i32
      %31 = vector.broadcast %c5_i32_20 : i32 to vector<5x1x1xi32>
      %32 = arith.cmpi sge, %28, %31 : vector<5x1x1xi32>
      %33 = vector.shape_cast %32 : vector<5x1x1xi1> to vector<5x1x1xi1>
      %34 = vector.broadcast %33 : vector<5x1x1xi1> to vector<5x8x128xi1>
      %35 = vector.shape_cast %11 : vector<1x128xf32> to vector<1x1x128xf32>
      %36 = vector.broadcast %35 : vector<1x1x128xf32> to vector<5x8x128xf32>
      %37 = arith.select %34, %36, %30 : vector<5x8x128xi1>, vector<5x8x128xf32>
      %c0_21 = arith.constant 0 : index
      %c1 = arith.constant 1 : index
      %c0_22 = arith.constant 0 : index
      %c0_23 = arith.constant 0 : index
      %38 = vector.load %arg6[%c0_21, %c1, %c0_22, %c0_23] : memref<1x6x8x128xf32, #tpu.memory_space<vmem>>, vector<1x5x8x128xf32>
      %39 = vector.shape_cast %38 : vector<1x5x8x128xf32> to vector<5x8x128xf32>
      %40 = vector.shape_cast %37 : vector<5x8x128xf32> to vector<1x5x8x128xf32>
      tpu.vector_store %arg6[%c0_21, %c1, %c0_22, %c0_23], %40 {strides = array<i32>} : memref<1x6x8x128xf32, #tpu.memory_space<vmem>>, vector<1x5x8x128xf32>,
    } else {
    }
    return
  }
  func.func @transform_0(%arg0: i32, %arg1: i32) -> (i32, i32, i32, i32) {
    %c0_i32 = arith.constant 0 : i32
    %0 = arith.minsi %arg1, %c0_i32 : i32
    %c0_i32_0 = arith.constant 0 : i32
    %c0_i32_1 = arith.constant 0 : i32
    %c0_i32_2 = arith.constant 0 : i32
    return %arg0, %0, %c0_i32_0, %c0_i32_1 : i32, i32, i32, i32
  }
  func.func @transform_1(%arg0: i32, %arg1: i32) -> (i32, i32, i32, i32) {
    %c6_i32 = arith.constant 6 : i32
    %0 = arith.muli %arg1, %c6_i32 : i32
    %c1_i32 = arith.constant 1 : i32
    %1 = arith.subi %0, %c1_i32 : i32
    %c0_i32 = arith.constant 0 : i32
    %c3_i32 = arith.constant 3 : i32
    %2 = arith.maxsi %c0_i32, %1 : i32
    %3 = arith.minsi %c3_i32, %2 : i32
    %c0_i32_0 = arith.constant 0 : i32
    %c0_i32_1 = arith.constant 0 : i32
    %c0_i32_2 = arith.constant 0 : i32
    return %arg0, %3, %c0_i32_0, %c0_i32_1 : i32, i32, i32, i32
  }
  func.func @transform_2(%arg0: i32, %arg1: i32) -> (i32, i32) {
    %c0_i32 = arith.constant 0 : i32
    %c0_i32_0 = arith.constant 0 : i32
    %c0_i32_1 = arith.constant 0 : i32
    return %c0_i32, %c0_i32_0 : i32, i32
  }
  func.func @transform_3(%arg0: i32, %arg1: i32) -> (i32, i32) {
    %c0_i32 = arith.constant 0 : i32
    %c0_i32_0 = arith.constant 0 : i32
    %c0_i32_1 = arith.constant 0 : i32
    return %c0_i32, %c0_i32_0 : i32, i32
  }
  func.func @transform_4(%arg0: i32, %arg1: i32) -> (i32, i32, i32, i32) {
    %c0_i32 = arith.constant 0 : i32
    %c0_i32_0 = arith.constant 0 : i32
    %c0_i32_1 = arith.constant 0 : i32
    return %arg0, %arg1, %c0_i32, %c0_i32_0 : i32, i32, i32, i32
  }
}

</mosaic_0001>

<bundles_post_ra>
// kernel: tpu_custom_call.1
= control target key start
LH: loop header
LB: loop body
LE: loop exit
PB: predicated region body
PF: predicated region fallthrough
CT: control target
= control target key end

     0   :  { %s946_s0 = inlined_call_operand.hbm [shape: f32[2,4,8,128], index: 0, kind: input, shape index: {}]   ;;  %s947_s1 = inlined_call_operand.hbm [shape: f32[2,4,8,128], index: 1, kind: input, shape index: {}]   ;;  %s948_s2 = inlined_call_operand.vmem [shape: f32[1,128], index: 2, kind: input, shape index: {}]   ;;  %s949_s3 = inlined_call_operand.vmem [shape: f32[1,128], index: 3, kind: input, shape index: {}]   ;;  %s950_s4 = inlined_call_operand.hbm [shape: f32[2,6,8,128], index: 4, kind: output, shape index: {}]  }
   0x1   :  { %952 = sst [smem:[#allocation11_spill]] %s946_s0 }
   0x2   :  { %9 = vsyncpa [#allocation3], 0 }
   0x3   :  { %11 = vsyncpa [#allocation3 + $0x1], 0 }
   0x4   :  { %12 = vsyncpa [#allocation6], 0 }
   0x5   :  { %14 = vsyncpa [#allocation6 + $0x1], 0 }
   0x6   :  { %15 = vsyncpa [#allocation4], 0 }
   0x7   :  { %17 = vsyncpa [#allocation4 + $0x1], 0  ;;  %s789_s15 = smov 0   ;;  %s791_s16 = smov 0  }
   0x8   :  { %s793_s17 = smov 0   ;;  %s795_s18 = smov 0  }
   0x9   :  { %s797_s19 = smov 0   ;;  %s799_s20 = smov 0  }
   0xa LB: > { %s530_s21 = sadd.s32 4294967295, %s755_s20   ;;  %s531_s22 = sadd.s32 4294967294, %s755_s20   ;;  %s755_s20 = sphi %s799_s20, %s23_s20   ;;  %s751_s19 = sphi %s797_s19, %s963_s19   ;;  %s747_s18 = sphi %s795_s18, %s962_s18   ;;  %s743_s17 = sphi %s793_s17, %s961_s17   ;;  %s739_s16 = sphi %s791_s16, %s960_s16   ;;  %s735_s15 = sphi %s789_s15, %s959_s15  }
   0xb   : > { %s35_s23 = sadd.s32 1, %s751_s19  ;;  %s48_s24 = sadd.s32 1, %s743_s17 }
   0xc   : > { %p37_p0 = scmp.ge.s32.totalorder %s35_s23, 2  ;;  %p55_p1 = scmp.ne.s32.totalorder %s743_s17, %s739_s16 }
   0xd   : > { %p56_p2 = scmp.eq.s32.totalorder %s755_s20, 0  ;;  %p61_p3 = scmp.ne.s32.totalorder %s739_s16, %s735_s15 }
   0xe   : > { %s965_s23 = smov (%p37_p0, %s35_s23), 0  ;;  %p62_p5 = scmp.eq.s32.totalorder %s530_s21, 0 }
   0xf   : > { %p830_p4 = por %p56_p2, %p55_p1  ;;  %s43_s26 = ssub.s32 %s751_s19, %s965_s23 }
  0x10   : > { %p169_p6 = scmp.eq.s32.totalorder %s530_s21, 1  ;;  %p46_p7 = scmp.eq.s32.totalorder %s43_s26, 0 }
  0x11   : > { %p836_p8 = por %p62_p5, %p61_p3  ;;  %p175_p10 = scmp.eq.s32.totalorder %s531_s22, 1 }
  0x12   : > { %p840_p9 = por %p169_p6, %p55_p1  ;;  %p951_p12 = scmp.ge.s32.totalorder %s755_s20, 2 }
  0x13   : > { %s845_s29 = scalar_select %p46_p7, %s743_s17, %s48_s24  }
  0x14   : > { %p847_p11 = por %p175_p10, %p61_p3  ;;  %197 = sbr.rel (%p951_p12) target bundleno = 59 (0x3b), region = 24 }
  0x19   : > { %200 = sbr.rel (!%p830_p4) target bundleno = 44 (0x2c), region = 28  ;;  %s201_s5 = sand.u32 (%p830_p4), 1, %s743_s17  }
  0x1a   : > { %s558_s6 = smul.u32 (%p830_p4), 48, %s201_s5  ;;  %s202_s7 = scalar_lea.sflag (%p830_p4), [#allocation3], %s201_s5 }
  0x1c   : > { %s205_s8 = scalar_lea.vmem (%p830_p4), [#allocation2], %s558_s6 }
  0x1e   : > { %213 = vsyncadd %s202_s7, 256  ;;  %s556_s9 = sshll.u32 %s751_s19, 9  ;;  %s220_s10 = sshll.u32 %s205_s8, 4  ;;  %s221_s10 = int_to_ptr.vmem [resolvable:$true] %s220_s10 }
  0x1f   : > { %s957_s0 = sld [smem:[#allocation11_spill]]  ;;  %s633_s14 = scalar_lea.vmem %s221_s10, 512 }
  0x20   : > { %p634_p13 = scmp.ne.s32.totalorder %s221_s10, %s633_s14  ;;  %s757_s21 = smov [#allocation2]  }
  0x21   : > { %s635_s22 = sshll.u32 %s757_s21, 4  ;;  %s636_s22 = int_to_ptr.vmem [resolvable:$false] %s635_s22 }
  0x22   : > { %s637_s24 = scalar_lea.vmem %s636_s22, 1536  ;;  %p638_p0 = scmp.lt.s32.totalorder %s221_s10, %s636_s22 }
  0x23   : > { %p639_p1 = scmp.lt.s32.totalorder %s637_s24, %s633_s14 }
  0x25   : > { %s218_s13 = scalar_lea.hbm %s957_s0, %s556_s9  ;;  %p640_p2 = por %p639_p1, %p638_p0 }
  0x27   : > { %p641_p3 = pnand %p640_p2, %p634_p13 }
  0x29   : > { %644 = shalt.err (!%p641_p3)
}
  0x2a   : > { %s758_s26 = smov 128   ;;  %s759_s5 = smov 8  }
  0x2b   : > { %226 = dma.hbm_to_vmem [thread:$0]  %s218_s13, 512, %s221_s10, %s202_s7, %s758_s26, %s758_s26, %s759_s5  }
  0x2c PF: > { %s230_s6 = sand.u32 1, %s743_s17   ;;  %s557_s8 = sshll.u32 %s751_s19, 9 }
  0x2d   : > { %s536_s9 = sshll.u32 %s230_s6, 3  ;;  %s247_s21 = scalar_lea.hbm %s947_s1, %s557_s8 }
  0x2e   : > { %s234_s0 = scalar_lea.vmem [#allocation5], %s536_s9  ;;  %s231_s14 = scalar_lea.sflag [#allocation6], %s230_s6 }
  0x2f   : > { %s249_s22 = sshll.u32 %s234_s0, 4  ;;  %s760_s7 = smov [#allocation5]   ;;  %s250_s22 = int_to_ptr.vmem [resolvable:$true] %s249_s22 }
  0x30   : > { %s657_s24 = scalar_lea.vmem %s250_s22, 128  ;;  %s661_s10 = sshll.u32 %s760_s7, 4  ;;  %s662_s10 = int_to_ptr.vmem [resolvable:$false] %s661_s10 }
  0x31   : > { %p658_p5 = scmp.ne.s32.totalorder %s250_s22, %s657_s24  ;;  %s663_s13 = scalar_lea.vmem %s662_s10, 256 }
  0x32   : > { %p664_p10 = scmp.lt.s32.totalorder %s250_s22, %s662_s10  ;;  %p665_p13 = scmp.lt.s32.totalorder %s663_s13, %s657_s24 }
  0x33   : > { %p659_p6 = pnand %p658_p5, %p830_p4 }
  0x34   : > { %p666_p0 = por %p665_p13, %p664_p10 }
  0x35   : > { %p660_p7 = pneg %p659_p6 }
  0x37   : > { %p667_p1 = pnand %p666_p0, %p660_p7 }
  0x39   : > { %670 = shalt.err (!%p667_p1)
}
  0x3a   : > { %561 = dma.hbm_to_vmem [thread:$0]  (%p830_p4), %s247_s21, 128, %s250_s22, %s231_s14  }
  0x3b PF: > { %p539_p2 = scmp.ge.s32.totalorder %s755_s20, 1  ;;  %p254_p3 = scmp.lt.s32.totalorder %s755_s20, 3 }
  0x3d   : > { %p255_p12 = pnand %p539_p2, %p254_p3 }
  0x3e   : > { %s873_s0 = sand.u32 (!%p255_p12), 1, %s739_s16  }
  0x3f   : > { %258 = sbr.rel (%p255_p12) target bundleno = 96 (0x60), region = 36  ;;  %s261_s5 = scalar_lea.sflag (!%p255_p12), [#allocation3], %s873_s0 }
  0x40   : > { %s559_s26 = smul.u32 (!%p255_p12), 48, %s873_s0 }
  0x42   : > { %s264_s6 = scalar_lea.vmem (!%p255_p12), [#allocation2], %s559_s26 }
  0x44   : > { %722 = dma.done.wait (%p836_p8), %s261_s5, 768  }
  0x45   : > { %724 = vsyncadd (%p836_p8), %s261_s5, 4294966528  ;;  %s270_s25 = scalar_lea.sflag [#allocation6], %s873_s0 }
  0x46   : > { %726 = dma.done.wait (%p836_p8), %s270_s25, 128  }
  0x47   : > { %728 = vsyncadd (%p836_p8), %s270_s25, 4294967168  ;;  %s302_s8 = scalar_lea.vmem [#allocation7], %s559_s26  ;;  %s560_s11 = smul.u32 768, %s747_s18  ;;  %v547_v0 = vld [vmem:[%s948_s2] ss:$0 sm:$0xff]  ;;  %v372_v2 = vld [vmem:[%s264_s6 + $0x8] sm:$0xff] }
  0x48   : > { %s418_s9 = sshll.u32 %s302_s8, 4  ;;  %v371_v1 = vld [vmem:[%s264_s6] sm:$0xff]  ;;  %364 = vst [vmem:[%s302_s8] sm:$0xff] %v547_v0  ;;  %549 = vst [vmem:[%s302_s8 + $0x10] sm:$0xff] %v372_v2  ;;  %v373_v3 = vld [vmem:[%s264_s6 + $0x10] sm:$0xff]  ;;  %s403_s7 = scalar_lea.sflag [#allocation4], %s873_s0  ;;  %s887_s9 = int_to_ptr.vmem [resolvable:$true] %s418_s9 }
  0x49   : > { %s895_s27 = scalar_lea.hbm %s950_s4, %s560_s11  ;;  %548 = vst [vmem:[%s302_s8 + $0x8] sm:$0xff] %v371_v1  ;;  %v374_v4 = vld [vmem:[%s264_s6 + $0x18] sm:$0xff]  ;;  %v546_v5 = vld [vmem:[%s949_s3] ss:$0 sm:$0xff]  ;;  %550 = vst [vmem:[%s302_s8 + $0x18] sm:$0xff] %v373_v3  ;;  %s671_s10 = scalar_lea.vmem %s887_s9, 768 }
  0x4a   : > { %551 = vst [vmem:[%s302_s8 + $0x20] sm:$0xff] %v374_v4  ;;  %552 = vst [vmem:[%s302_s8 + $0x28] sm:$0xff] %v546_v5  ;;  %p672_p4 = scmp.ne.s32.totalorder %s887_s9, %s671_s10  ;;  %s761_s13 = smov [#allocation7]  }
  0x4b   : > { %s675_s26 = sshll.u32 %s761_s13, 4  ;;  %s676_s26 = int_to_ptr.vmem [resolvable:$false] %s675_s26 }
  0x4c   : > { %p673_p8 = pnand %p672_p4, %p840_p9  ;;  %s677_s5 = scalar_lea.vmem %s676_s26, 1536 }
  0x4d   : > { %p678_p5 = scmp.lt.s32.totalorder %s887_s9, %s676_s26  ;;  %p679_p6 = scmp.lt.s32.totalorder %s677_s5, %s671_s10 }
  0x4e   : > { %p674_p12 = pneg %p673_p8 }
  0x4f   : > { %p680_p7 = por %p679_p6, %p678_p5 }
  0x51   : > { %p681_p10 = pnand %p680_p7, %p674_p12 }
  0x53   : > { %684 = shalt.err (!%p681_p10)
}
  0x54   : > { %s685_s6 = scalar_lea.hbm %s895_s27, 768  ;;  %s689_s11 = scalar_lea.hbm %s950_s4, 1536 }
  0x55   : > { %p686_p13 = scmp.ne.s32.totalorder %s895_s27, %s685_s6  ;;  %p690_p2 = scmp.lt.s32.totalorder %s895_s27, %s950_s4 }
  0x56   : > { %p691_p3 = scmp.lt.s32.totalorder %s689_s11, %s685_s6 }
  0x57   : > { %p687_p0 = pnand %p686_p13, %p840_p9 }
  0x58   : > { %p692_p4 = por %p691_p3, %p690_p2 }
  0x59   : > { %p688_p1 = pneg %p687_p0 }
  0x5b   : > { %p693_p8 = pnand %p692_p4, %p688_p1 }
  0x5d   : > { %696 = shalt.err (!%p693_p8)
}
  0x5e   : > { %s762_s22 = smov 128   ;;  %s763_s14 = smov 8  }
  0x5f   : > { %564 = dma.vmem_to_hbm [thread:$0]  (%p840_p9), %s887_s9, 768, %s895_s27, %s403_s7, %s762_s22, %s762_s22, %s763_s14  }
  0x60 PF: > { %s433_s18 = sand.u32 1, %s735_s15   ;;  %p958_p12 = scmp.ge.s32.totalorder %s755_s20, 2 }
  0x61   : > { %s434_s24 = scalar_lea.sflag [#allocation4], %s433_s18 }
  0x62   : > { %p567_p5 = pnand %p958_p12, %p847_p11 }
  0x64   : > { %p568_p6 = pneg %p567_p5 }
  0x66   : > { %730 = dma.done.wait (%p568_p6), %s434_s24, 768  }
  0x67   : > { %732 = vsyncadd (%p568_p6), %s434_s24, 4294966528  ;;  %s23_s20 = sadd.s32 1, %s755_s20   ;;  %s959_s15 = smov %s739_s16 }
  0x68   : > { %p20_p7 = scmp.ge.s32.totalorder %s23_s20, 4   ;;  %s960_s16 = smov %s743_s17 }
  0x69   : > { %s961_s17 = smov %s845_s29  ;;  %s962_s18 = smov %s751_s19 }
  0x6a   : > { %s963_s19 = smov %s965_s23  ;;  %22 = sbr.rel (!%p20_p7) target bundleno = 10 (0xa), region = 104 }
  0x6f   :  { %439 = vsyncpa [#allocation3], 1 }
  0x70   :  { %441 = vsyncpa [#allocation3 + $0x1], 1 }
  0x71   :  { %442 = vsyncpa [#allocation6], 1 }
  0x72   :  { %444 = vsyncpa [#allocation6 + $0x1], 1 }
  0x73   :  { %445 = vsyncpa [#allocation4], 1 }
  0x74   :  { %447 = vsyncpa [#allocation4 + $0x1], 1 }

</bundles_post_ra>
